<compile_context>
chip_gen: v6e
topology: v6e:2x2x1
jax: 0.10.0
libtpu: 0.0.40
codegen_flags: <defaults>
</compile_context>

<pallas_src>
import math
import functools

import jax
import jax.numpy as jnp
from jax import lax
from jax.experimental import pallas as pl
from jax.experimental.pallas import tpu as pltpu


def _vmem_capacity_bytes() -> int:
    """Per-core VMEM capacity; conservative (v7x-like) fallback off-TPU."""
    try:
        return int(pltpu.get_tpu_info().vmem_capacity_bytes)
    except Exception:
        return 64 * 1024 * 1024


def _choose_tq(S: int, vmem_cap: int) -> int:
    """Query-tile size: whole S for small sequences, else a 128-multiple tile
    whose upper bound depends on the VMEM generation (1024 on 128 MiB parts,
    256 on 64 MiB parts)."""
    if S <= 512:
        return S
    max_t = 1024 if vmem_cap >= 100 * 1024 * 1024 else 256
    for t in (1024, 512, 256, 128):
        if t <= max_t and S % t == 0:
            return t
    return S  # fallback: whole sequence per step


def _attn_head_kernel(x_ref, mask_ref, wqkv_ref, bqkv_ref, o_ref,
                      q_s, k_s, v_s, *, d_pad, d_out, inv_scale):
    # Grid = (batch, query-tile). Batch is "parallel"; q-tile is "arbitrary"
    # because the q/k/v scratch is written at qi == 0 and reused across q tiles.
    qi = pl.program_id(1)
    tq = o_ref.shape[0]

    @pl.when(qi == 0)
    def _():
        # Fused QKV projection for this batch element's whole sequence.
        # bf16 operands, f32 accumulation on the MXU.
        qkv = jnp.dot(x_ref[...], wqkv_ref[...],
                      preferred_element_type=jnp.float32) + bqkv_ref[...]
        # Lane-aligned split (d_pad is a multiple of 128); fold 1/sqrt(S) into q.
        q_s[...] = (qkv[:, :d_pad] * inv_scale).astype(q_s.dtype)
        k_s[...] = qkv[:, d_pad:2 * d_pad].astype(k_s.dtype)
        v_s[...] = qkv[:, 2 * d_pad:].astype(v_s.dtype)

    row0 = pl.multiple_of(qi * tq, tq)
    q = q_s[pl.ds(row0, tq), :]                       # (tq, P) bf16, pre-scaled

    # scores = q @ k^T (contract on the padded head dim; padded cols are zero).
    scores = lax.dot_general(q, k_s[...],
                             (((1,), (1,)), ((), ())),
                             preferred_element_type=jnp.float32)   # (tq, S)

    # masked_fill_(attention_mask, -1e9)
    scores = jnp.where(mask_ref[...] != 0, jnp.float32(-1e9), scores)

    # Numerically-stable softmax over the key axis.
    scores = scores - jnp.max(scores, axis=-1, keepdims=True)
    p = jnp.exp(scores)
    inv_l = pl.reciprocal(jnp.sum(p, axis=-1, keepdims=True), approx=False)

    # context = (p @ v) * inv_l  -- normalize AFTER the matmul (tq*D_out muls).
    ctx = jnp.dot(p.astype(v_s.dtype), v_s[...],
                  preferred_element_type=jnp.float32) * inv_l      # (tq, P)
    o_ref[...] = ctx[:, :d_out]


def attention_head(x, attention_mask, wq, bq, wk, bk, wv, bv):
    """x: (B, S, D_in) f32; attention_mask: (B, S, S) bool (True = mask out).

    wq/wk/wv: (D_out, D_in) PyTorch-layout weights; bq/bk/bv: (D_out,) biases.
    Returns context: (B, S, D_out) f32.
    """
    B, S, D_in = x.shape
    D_out = wq.shape[0]
    inv_scale = 1.0 / (float(S) ** 0.5)     # matches query.size(1) ** 0.5

    # Pad each q/k/v block to a 128-lane multiple so the fused-projection split
    # is lane-tile aligned.  Padded weight/bias columns are zero -> padded q/k
    # columns contribute 0 to the scores contraction; padded v columns are
    # sliced off before the output store.
    P = ((D_out + 127) // 128) * 128

    def _pad_wt(w):                                   # (D_out, D_in) -> (D_in, P)
        wt = w.T.astype(jnp.float32)
        return jnp.pad(wt, ((0, 0), (0, P - D_out))) if P != D_out else wt

    def _pad_b(b):                                    # (D_out,) -> (P,)
        return jnp.pad(b, (0, P - D_out)) if P != D_out else b

    wqkv = jnp.concatenate([_pad_wt(wq), _pad_wt(wk), _pad_wt(wv)],
                           axis=1).astype(jnp.bfloat16)            # (D_in, 3P)
    bqkv = jnp.concatenate([_pad_b(bq), _pad_b(bk), _pad_b(bv)]
                           ).reshape(1, 3 * P).astype(jnp.float32)  # (1, 3P)
    x_bf16 = x.astype(jnp.bfloat16)
    mask_i8 = attention_mask.astype(jnp.int8)

    vmem_cap = _vmem_capacity_bytes()
    tq = _choose_tq(S, vmem_cap)
    assert S % tq == 0
    n_q = S // tq
    vmem_limit = (96 if vmem_cap >= 100 * 1024 * 1024 else 40) * 1024 * 1024

    kernel = functools.partial(_attn_head_kernel,
                               d_pad=P, d_out=D_out, inv_scale=inv_scale)

    return pl.pallas_call(
        kernel,
        out_shape=jax.ShapeDtypeStruct((B, S, D_out), jnp.float32),
        grid_spec=pltpu.PrefetchScalarGridSpec(
            num_scalar_prefetch=0,
            grid=(B, n_q),
            in_specs=[
                # x: full sequence per batch element (same block across q tiles).
                pl.BlockSpec((pl.Squeezed(), S, D_in), lambda b, qi: (b, 0, 0)),
                # mask: (tq, S) query-row tile, int8.
                pl.BlockSpec((pl.Squeezed(), tq, S), lambda b, qi: (b, qi, 0)),
                # fused QKV weight / bias: resident (constant index_map).
                pl.BlockSpec((D_in, 3 * P), lambda b, qi: (0, 0)),
                pl.BlockSpec((1, 3 * P), lambda b, qi: (0, 0)),
            ],
            out_specs=pl.BlockSpec((pl.Squeezed(), tq, D_out),
                                   lambda b, qi: (b, qi, 0)),
            scratch_shapes=[
                pltpu.VMEM((S, P), jnp.bfloat16),   # q (pre-scaled)
                pltpu.VMEM((S, P), jnp.bfloat16),   # k
                pltpu.VMEM((S, P), jnp.bfloat16),   # v
            ],
        ),
        compiler_params=pltpu.CompilerParams(
            dimension_semantics=("parallel", "arbitrary"),
            vmem_limit_bytes=vmem_limit,
        ),
    )(x_bf16, mask_i8, wqkv, bqkv)


def _reference(x, mask, wq, bq, wk, bk, wv, bv):
    hp = lax.Precision.HIGHEST
    q = jnp.einsum("bsd,od->bso", x, wq, precision=hp) + bq
    k = jnp.einsum("bsd,od->bso", x, wk, precision=hp) + bk
    v = jnp.einsum("bsd,od->bso", x, wv, precision=hp) + bv
    scale = x.shape[1] ** 0.5
    scores = jnp.einsum("bqo,bko->bqk", q, k, precision=hp) / scale
    scores = jnp.where(mask, -1e9, scores)
    attn = jax.nn.softmax(scores, axis=-1)
    return jnp.einsum("bqk,bko->bqo", attn, v, precision=hp)


if __name__ == "__main__":
    B, S, D_in, D_out = 2, 8, 32, 32

    key = jax.random.PRNGKey(0)
    kx, kq, kbq, kk, kbk, kv, kbv, km = jax.random.split(key, 8)

    x = jax.random.normal(kx, (B, S, D_in), dtype=jnp.float32)

    # nn.Linear-style deterministic init: U(-1/sqrt(fan_in), 1/sqrt(fan_in))
    bound = 1.0 / math.sqrt(D_in)
    wq = jax.random.uniform(kq, (D_out, D_in), jnp.float32, -bound, bound)
    bq = jax.random.uniform(kbq, (D_out,), jnp.float32, -bound, bound)
    wk = jax.random.uniform(kk, (D_out, D_in), jnp.float32, -bound, bound)
    bk = jax.random.uniform(kbk, (D_out,), jnp.float32, -bound, bound)
    wv = jax.random.uniform(kv, (D_out, D_in), jnp.float32, -bound, bound)
    bv = jax.random.uniform(kbv, (D_out,), jnp.float32, -bound, bound)

    # Boolean mask: True == position is masked out (as in masked_fill_).
    attention_mask = jax.random.bernoulli(km, p=0.25, shape=(B, S, S))

    out = attention_head(x, attention_mask, wq, bq, wk, bk, wv, bv)
    out = jax.block_until_ready(out)

    ref = _reference(x, attention_mask, wq, bq, wk, bk, wv, bv)
    assert out.shape == (B, S, D_out)
    # Tolerance covers bf16 MXU operands (f32 accumulation) through three matmul
    # stages + softmax (~1e-2 worst case at these magnitudes); a semantic error
    # would produce O(1) deviations, so this still validates the forward pass.
    assert jnp.allclose(out, ref, atol=3e-2, rtol=3e-2), "mismatch vs reference"

    print("KERNEL_OK")
</pallas_src>

<mosaic_0001>
module attributes {stable_mosaic.version = 11 : i64} {
  func.func @_attn_head_kernel(%arg0: i32, %arg1: i32, %arg2: memref<1x8x32xbf16, #tpu.memory_space<vmem>>, %arg3: memref<1x8x8xi8, #tpu.memory_space<vmem>>, %arg4: memref<32x384xbf16, #tpu.memory_space<vmem>>, %arg5: memref<1x384xf32, #tpu.memory_space<vmem>>, %arg6: memref<1x8x32xf32, #tpu.memory_space<vmem>>, %arg7: memref<8x128xbf16, #tpu.memory_space<vmem>>, %arg8: memref<8x128xbf16, #tpu.memory_space<vmem>>, %arg9: memref<8x128xbf16, #tpu.memory_space<vmem>>) attributes {dimension_semantics = [#tpu.dimension_semantics<parallel>, #tpu.dimension_semantics<arbitrary>], iteration_bounds = array<i64: 2, 1>, scalar_prefetch = 0 : i64, scratch_operands = 3 : i64, tpu.core_type = #tpu.core_type<tc>, window_params = [{transform_indices = @transform_0, window_bounds = array<i64: 1, 8, 32>}, {transform_indices = @transform_1, window_bounds = array<i64: 1, 8, 8>}, {pipeline_mode = #tpu.pipeline_mode<synchronous>, transform_indices = @transform_2, window_bounds = array<i64: 32, 384>}, {pipeline_mode = #tpu.pipeline_mode<synchronous>, transform_indices = @transform_3, window_bounds = array<i64: 1, 384>}, {transform_indices = @transform_4, window_bounds = array<i64: 1, 8, 32>}]} {
    %c0_i32 = arith.constant 0 : i32
    %0 = arith.cmpi eq, %arg1, %c0_i32 : i32
    %1 = arith.extui %0 : i1 to i32
    %c0_i32_0 = arith.constant 0 : i32
    %2 = arith.cmpi ne, %1, %c0_i32_0 : i32
    scf.if %2 {
      %c0_15 = arith.constant 0 : index
      %c0_16 = arith.constant 0 : index
      %c0_17 = arith.constant 0 : index
      %32 = vector.load %arg2[%c0_15, %c0_16, %c0_17] : memref<1x8x32xbf16, #tpu.memory_space<vmem>>, vector<1x8x32xbf16>
      %33 = vector.shape_cast %32 : vector<1x8x32xbf16> to vector<8x32xbf16>
      %c0_18 = arith.constant 0 : index
      %c0_19 = arith.constant 0 : index
      %34 = vector.load %arg4[%c0_18, %c0_19] : memref<32x384xbf16, #tpu.memory_space<vmem>>, vector<32x384xbf16>
      %cst_20 = arith.constant dense<0.000000e+00> : vector<8x384xf32>
      %35 = tpu.matmul %33, %34, %cst_20 {dimension_numbers = #tpu.dot_dimension_numbers<[1], [0], [0], [1], [0, 0, 1, 1], [], []>} : vector<8x32xbf16>, vector<32x384xbf16>, vector<8x384xf32> -> vector<8x384xf32>
      %c0_21 = arith.constant 0 : index
      %c0_22 = arith.constant 0 : index
      %36 = vector.load %arg5[%c0_21, %c0_22] : memref<1x384xf32, #tpu.memory_space<vmem>>, vector<1x384xf32>
      %37 = vector.broadcast %36 : vector<1x384xf32> to vector<8x384xf32>
      %38 = arith.addf %35, %37 : vector<8x384xf32>
      %39 = vector.extract_strided_slice %38 {offsets = [0, 0], sizes = [8, 128], strides = [1, 1]} : vector<8x384xf32> to vector<8x128xf32>
      %cst_23 = arith.constant 0.353553385 : f32
      %40 = vector.broadcast %cst_23 : f32 to vector<8x128xf32>
      %41 = arith.mulf %39, %40 : vector<8x128xf32>
      %42 = arith.truncf %41 : vector<8x128xf32> to vector<8x128xbf16>
      %c0_24 = arith.constant 0 : index
      %c0_25 = arith.constant 0 : index
      %43 = vector.load %arg7[%c0_24, %c0_25] : memref<8x128xbf16, #tpu.memory_space<vmem>>, vector<8x128xbf16>
      tpu.vector_store %arg7[%c0_24, %c0_25], %42 {strides = array<i32>} : memref<8x128xbf16, #tpu.memory_space<vmem>>, vector<8x128xbf16>,
      %44 = vector.extract_strided_slice %38 {offsets = [0, 128], sizes = [8, 128], strides = [1, 1]} : vector<8x384xf32> to vector<8x128xf32>
      %45 = arith.truncf %44 : vector<8x128xf32> to vector<8x128xbf16>
      %c0_26 = arith.constant 0 : index
      %c0_27 = arith.constant 0 : index
      %46 = vector.load %arg8[%c0_26, %c0_27] : memref<8x128xbf16, #tpu.memory_space<vmem>>, vector<8x128xbf16>
      tpu.vector_store %arg8[%c0_26, %c0_27], %45 {strides = array<i32>} : memref<8x128xbf16, #tpu.memory_space<vmem>>, vector<8x128xbf16>,
      %47 = vector.extract_strided_slice %38 {offsets = [0, 256], sizes = [8, 128], strides = [1, 1]} : vector<8x384xf32> to vector<8x128xf32>
      %48 = arith.truncf %47 : vector<8x128xf32> to vector<8x128xbf16>
      %c0_28 = arith.constant 0 : index
      %c0_29 = arith.constant 0 : index
      %49 = vector.load %arg9[%c0_28, %c0_29] : memref<8x128xbf16, #tpu.memory_space<vmem>>, vector<8x128xbf16>
      tpu.vector_store %arg9[%c0_28, %c0_29], %48 {strides = array<i32>} : memref<8x128xbf16, #tpu.memory_space<vmem>>, vector<8x128xbf16>,
    } else {
    }
    %c8_i32 = arith.constant 8 : i32
    %3 = arith.muli %arg1, %c8_i32 : i32
    %4 = tpu.assume_multiple %3, 8 : i32
    %5 = arith.index_cast %4 : i32 to index
    %c0 = arith.constant 0 : index
    %6 = vector.load %arg7[%5, %c0] : memref<8x128xbf16, #tpu.memory_space<vmem>>, vector<8x128xbf16>
    %c0_1 = arith.constant 0 : index
    %c0_2 = arith.constant 0 : index
    %7 = vector.load %arg8[%c0_1, %c0_2] : memref<8x128xbf16, #tpu.memory_space<vmem>>, vector<8x128xbf16>
    %cst = arith.constant dense<0.000000e+00> : vector<8x8xf32>
    %8 = tpu.matmul %6, %7, %cst {dimension_numbers = #tpu.dot_dimension_numbers<[1], [1], [0], [0], [0, 0, 1, 0], [], []>} : vector<8x128xbf16>, vector<8x128xbf16>, vector<8x8xf32> -> vector<8x8xf32>
    %c0_3 = arith.constant 0 : index
    %c0_4 = arith.constant 0 : index
    %c0_5 = arith.constant 0 : index
    %9 = vector.load %arg3[%c0_3, %c0_4, %c0_5] : memref<1x8x8xi8, #tpu.memory_space<vmem>>, vector<1x8x8xi8>
    %10 = vector.shape_cast %9 : vector<1x8x8xi8> to vector<8x8xi8>
    %c0_i8 = arith.constant 0 : i8
    %11 = vector.broadcast %c0_i8 : i8 to vector<8x8xi8>
    %12 = arith.cmpi ne, %10, %11 : vector<8x8xi8>
    %cst_6 = arith.constant -1.000000e+09 : f32
    %13 = vector.broadcast %cst_6 : f32 to vector<8x8xf32>
    %14 = arith.select %12, %13, %8 : vector<8x8xi1>, vector<8x8xf32>
    %cst_7 = arith.constant dense<0xFF800000> : vector<8xf32>
    %15 = vector.multi_reduction <maximumf>, %14, %cst_7 [1] : vector<8x8xf32> to vector<8xf32>
    %16 = vector.shape_cast %15 : vector<8xf32> to vector<8x1xf32>
    %17 = vector.broadcast %16 : vector<8x1xf32> to vector<8x8xf32>
    %18 = arith.subf %14, %17 : vector<8x8xf32>
    %19 = math.exp %18 : vector<8x8xf32>
    %cst_8 = arith.constant dense<0.000000e+00> : vector<8xf32>
    %20 = vector.multi_reduction <add>, %19, %cst_8 [1] : vector<8x8xf32> to vector<8xf32>
    %21 = vector.shape_cast %20 : vector<8xf32> to vector<8x1xf32>
    %22 = tpu.reciprocal %21 : vector<8x1xf32> -> vector<8x1xf32>
    %23 = arith.truncf %19 : vector<8x8xf32> to vector<8x8xbf16>
    %c0_9 = arith.constant 0 : index
    %c0_10 = arith.constant 0 : index
    %24 = vector.load %arg9[%c0_9, %c0_10] : memref<8x128xbf16, #tpu.memory_space<vmem>>, vector<8x128xbf16>
    %cst_11 = arith.constant dense<0.000000e+00> : vector<8x128xf32>
    %25 = tpu.matmul %23, %24, %cst_11 {dimension_numbers = #tpu.dot_dimension_numbers<[1], [0], [0], [1], [0, 0, 1, 1], [], []>} : vector<8x8xbf16>, vector<8x128xbf16>, vector<8x128xf32> -> vector<8x128xf32>
    %26 = vector.broadcast %22 : vector<8x1xf32> to vector<8x128xf32>
    %27 = arith.mulf %25, %26 : vector<8x128xf32>
    %28 = vector.extract_strided_slice %27 {offsets = [0, 0], sizes = [8, 32], strides = [1, 1]} : vector<8x128xf32> to vector<8x32xf32>
    %c0_12 = arith.constant 0 : index
    %c0_13 = arith.constant 0 : index
    %c0_14 = arith.constant 0 : index
    %29 = vector.load %arg6[%c0_12, %c0_13, %c0_14] : memref<1x8x32xf32, #tpu.memory_space<vmem>>, vector<1x8x32xf32>
    %30 = vector.shape_cast %29 : vector<1x8x32xf32> to vector<8x32xf32>
    %31 = vector.shape_cast %28 : vector<8x32xf32> to vector<1x8x32xf32>
    tpu.vector_store %arg6[%c0_12, %c0_13, %c0_14], %31 {strides = array<i32>} : memref<1x8x32xf32, #tpu.memory_space<vmem>>, vector<1x8x32xf32>,
    return
  }
  func.func @transform_0(%arg0: i32, %arg1: i32) -> (i32, i32, i32) {
    %c0_i32 = arith.constant 0 : i32
    %c0_i32_0 = arith.constant 0 : i32
    %c0_i32_1 = arith.constant 0 : i32
    return %arg0, %c0_i32, %c0_i32_0 : i32, i32, i32
  }
  func.func @transform_1(%arg0: i32, %arg1: i32) -> (i32, i32, i32) {
    %c0_i32 = arith.constant 0 : i32
    %c0_i32_0 = arith.constant 0 : i32
    return %arg0, %arg1, %c0_i32 : i32, i32, i32
  }
  func.func @transform_2(%arg0: i32, %arg1: i32) -> (i32, i32) {
    %c0_i32 = arith.constant 0 : i32
    %c0_i32_0 = arith.constant 0 : i32
    %c0_i32_1 = arith.constant 0 : i32
    return %c0_i32, %c0_i32_0 : i32, i32
  }
  func.func @transform_3(%arg0: i32, %arg1: i32) -> (i32, i32) {
    %c0_i32 = arith.constant 0 : i32
    %c0_i32_0 = arith.constant 0 : i32
    %c0_i32_1 = arith.constant 0 : i32
    return %c0_i32, %c0_i32_0 : i32, i32
  }
  func.func @transform_4(%arg0: i32, %arg1: i32) -> (i32, i32, i32) {
    %c0_i32 = arith.constant 0 : i32
    %c0_i32_0 = arith.constant 0 : i32
    return %arg0, %arg1, %c0_i32 : i32, i32, i32
  }
}

</mosaic_0001>

<bundles_post_ra>
// kernel: tpu_custom_call.1
= control target key start
LH: loop header
LB: loop body
LE: loop exit
PB: predicated region body
PF: predicated region fallthrough
CT: control target
= control target key end

     0   :  { %s1250_s0 = inlined_call_operand.hbm [shape: bf16[2,8,32], index: 0, kind: input, shape index: {}]   ;;  %s1251_s1 = inlined_call_operand.hbm [shape: s8[2,8,8], index: 1, kind: input, shape index: {}]   ;;  %s1252_s2 = inlined_call_operand.hbm [shape: bf16[32,384], index: 2, kind: input, shape index: {}]   ;;  %s1253_s3 = inlined_call_operand.vmem [shape: f32[1,384], index: 3, kind: input, shape index: {}]   ;;  %s1254_s4 = inlined_call_operand.hbm [shape: f32[2,8,32], index: 4, kind: output, shape index: {}]  }
   0x1   :  { %1256 = sst [smem:[#allocation18_spill]] %s1250_s0 }
   0x2   :  { %1257 = sst [smem:[#allocation19_spill]] %s1252_s2 }
   0x3   :  { %9 = vsyncpa [#allocation6], 0 }
   0x4   :  { %11 = vsyncpa [#allocation6 + $0x1], 0 }
   0x5   :  { %12 = vsyncpa [#allocation9], 0 }
   0x6   :  { %14 = vsyncpa [#allocation9 + $0x1], 0 }
   0x7   :  { %15 = vsyncpa [#allocation7], 0 }
   0x8   :  { %17 = vsyncpa [#allocation7 + $0x1], 0  ;;  %s1038_s15 = smov 0   ;;  %s1040_s16 = smov 0  }
   0x9   :  { %s1042_s17 = smov 0   ;;  %s1044_s18 = smov 0  }
   0xa   :  { %s1046_s19 = smov 0   ;;  %s1048_s20 = smov 0  }
   0xb LB: > { %s1069_s21 = sadd.s32 4294967295, %s1002_s20   ;;  %s684_s22 = sadd.s32 4294967294, %s1002_s20   ;;  %s1002_s20 = sphi %s1048_s20, %s23_s20   ;;  %s998_s19 = sphi %s1046_s19, %s1277_s19   ;;  %s994_s18 = sphi %s1044_s18, %s1276_s18   ;;  %s990_s17 = sphi %s1042_s17, %s1275_s17   ;;  %s986_s16 = sphi %s1040_s16, %s1274_s16   ;;  %s982_s15 = sphi %s1038_s15, %s1273_s15  }
   0xc   : > { %p55_p0 = scmp.ne.s32.totalorder %s986_s16, %s982_s15  ;;  %p56_p1 = scmp.eq.s32.totalorder %s1069_s21, 0 }
   0xd   : > { %p157_p3 = scmp.eq.s32.totalorder %s684_s22, 1  ;;  %p685_p5 = scmp.ge.s32.totalorder %s1002_s20, 1 }
   0xe   : > { %p1078_p4 = por %p56_p1, %p55_p0  ;;  %p164_p7 = scmp.lt.s32.totalorder %s1002_s20, 3 }
   0xf   : > { %p1083_p6 = por %p157_p3, %p55_p0  ;;  %s1004_s26 = smov [#allocation10]  }
  0x10   : > { %p1088_p8 = pnand %p685_p5, %p164_p7  ;;  %s176_s27 = sshll.u32 %s1004_s26, 4  ;;  %s177_s27 = int_to_ptr.vmem [resolvable:$true] %s176_s27 }
  0x11   : > { %s1259_s24 = scalar_select %p1083_p6, 1, 0 }
  0x12   : > { %p747_p9 = pneg %p1088_p8  ;;  %p687_p10 = scmp.ge.s32.totalorder %s1002_s20, 2 }
  0x13   : > { %s35_s29 = sadd.s32 1, %s998_s19  ;;  %s843_s30 = scalar_lea.vmem %s177_s27, 768 }
  0x14   : > { %p1097_p11 = pnand %p747_p9, %p56_p1  ;;  %p844_p13 = scmp.ne.s32.totalorder %s177_s27, %s843_s30 }
  0x15   : > { %p851_p5 = scmp.lt.s32.totalorder %s177_s27, %s177_s27  ;;  %p852_p7 = scmp.lt.s32.totalorder %s843_s30, %s843_s30 }
  0x16   : > { %p834_p12 = pneg %p1097_p11 }
  0x17   : > { %p853_p2 = por %p852_p7, %p851_p5 }
  0x18   : > { %p846_p0 = pnand %p844_p13, %p834_p12 }
  0x1a   : > { %p847_p3 = pneg %p846_p0 }
  0x1c   : > { %p854_p6 = pnand %p853_p2, %p847_p3 }
  0x1e   : > { %857 = shalt.err (!%p854_p6)
}
  0x1f   : > { %s1005_s5 = smov 192   ;;  %s1006_s6 = smov 12  }
  0x20   : > { %s1262_s2 = sld [smem:[#allocation19_spill]]  ;;  %p37_p2 = scmp.ge.s32.totalorder %s35_s29, 2 }
  0x21   : > { %s42_s9 = sadd.s32 1, %s990_s17  ;;  %p49_p6 = scmp.ne.s32.totalorder %s990_s17, %s986_s16 }
  0x22   : > { %p50_p9 = scmp.eq.s32.totalorder %s1002_s20, 0  ;;  %s1279_s29 = smov (%p37_p2, %s35_s29), 0 }
  0x23   : > { %1263 = sst [smem:[#allocation16_spill]] %s1279_s29  ;;  %p1265_p13 = scmp.eq.s32.totalorder %s1069_s21, 1 }
  0x24   : > { %p1115_p12 = por %p50_p9, %p49_p6  ;;  %s39_s12 = ssub.s32 %s998_s19, %s1279_s29 }
  0x25   : > { %p1121_p0 = por %p1265_p13, %p49_p6  ;;  %p40_p3 = scmp.eq.s32.totalorder %s39_s12, 0 }
  0x26   : > { %750 = dma.hbm_to_vmem [thread:$0]  (!%p1097_p11), %s1262_s2, 768, %s177_s27, [#allocation9], %s1005_s5, %s1005_s5, %s1006_s6  }
  0x27   : > { %p763_p11 = scmp.lt.s32.totalorder %s1002_s20, 2  ;;  %s1129_s13 = sand.u32 1, %s990_s17  }
  0x28   : > { %s688_s14 = sshll.u32 %s1129_s13, 2  ;;  %s689_s26 = sshll.u32 %s998_s19, 6 }
  0x29   : > { %s1133_s22 = scalar_select %p40_p3, %s990_s17, %s42_s9  }
  0x2a   : > { %s1268_s0 = sld [smem:[#allocation18_spill]]  ;;  %s197_s5 = scalar_lea.vmem [#allocation5], %s688_s14 }
  0x2b   : > { %1267 = sst [smem:[#allocation17_spill]] %s1133_s22  ;;  %s204_s6 = sshll.u32 %s197_s5, 4  ;;  %s205_s6 = int_to_ptr.vmem [resolvable:$true] %s204_s6 }
  0x2c   : > { %p1141_p5 = pnand %p763_p11, %p1115_p12  ;;  %s211_s8 = sand.u32 1, %s1002_s20  }
  0x2d   : > { %s690_s12 = sshll.u32 %s1129_s13, 1  ;;  %s194_s2 = scalar_lea.sflag [#allocation6], %s1129_s13 }
  0x2e   : > { %p860_p7 = pneg %p1141_p5  ;;  %s871_s9 = scalar_lea.vmem %s205_s6, 64 }
  0x2f   : > { %p872_p2 = scmp.ne.s32.totalorder %s205_s6, %s871_s9  ;;  %s1007_s14 = smov [#allocation5]  }
  0x30   : > { %s202_s30 = scalar_lea.hbm %s1268_s0, %s689_s26  ;;  %s876_s26 = sshll.u32 %s1007_s14, 4  ;;  %s877_s26 = int_to_ptr.vmem [resolvable:$false] %s876_s26 }
  0x31   : > { %p874_p6 = pnand %p872_p2, %p860_p7  ;;  %s878_s10 = scalar_lea.vmem %s877_s26, 128 }
  0x32   : > { %p879_p12 = scmp.lt.s32.totalorder %s205_s6, %s877_s26  ;;  %p880_p13 = scmp.lt.s32.totalorder %s878_s10, %s871_s9 }
  0x33   : > { %p875_p9 = pneg %p874_p6 }
  0x34   : > { %p881_p11 = por %p880_p13, %p879_p12 }
  0x36   : > { %p882_p3 = pnand %p881_p11, %p875_p9 }
  0x38   : > { %885 = shalt.err (!%p882_p3)
}
  0x39   : > { %754 = dma.hbm_to_vmem [thread:$0]  (!%p1141_p5), %s202_s30, 64, %s205_s6, %s194_s2  }
  0x3a   : > { %s691_s13 = sshll.u32 %s998_s19, 5  ;;  %s215_s0 = scalar_lea.vmem [#allocation8], %s690_s12 }
  0x3b   : > { %s221_s5 = scalar_lea.hbm %s1251_s1, %s691_s13  ;;  %s223_s29 = sshll.u32 %s215_s0, 4  ;;  %s224_s29 = int_to_ptr.vmem [resolvable:$true] %s223_s29 }
  0x3c   : > { %s212_s14 = scalar_lea.sflag [#allocation9], %s211_s8  ;;  %s899_s22 = scalar_lea.vmem %s224_s29, 32 }
  0x3d   : > { %p900_p2 = scmp.ne.s32.totalorder %s224_s29, %s899_s22  ;;  %s1008_s9 = smov [#allocation8]  }
  0x3e   : > { %s904_s26 = sshll.u32 %s1008_s9, 4  ;;  %s905_s26 = int_to_ptr.vmem [resolvable:$false] %s904_s26 }
  0x3f   : > { %p902_p6 = pnand %p900_p2, %p860_p7  ;;  %s906_s10 = scalar_lea.vmem %s905_s26, 64 }
  0x40   : > { %p907_p12 = scmp.lt.s32.totalorder %s224_s29, %s905_s26  ;;  %p908_p13 = scmp.lt.s32.totalorder %s906_s10, %s899_s22 }
  0x41   : > { %p903_p9 = pneg %p902_p6 }
  0x42   : > { %p909_p11 = por %p908_p13, %p907_p12 }
  0x44   : > { %p910_p3 = pnand %p909_p11, %p903_p9 }
  0x46   : > { %913 = shalt.err (!%p910_p3)
}
  0x47   : > { %757 = dma.hbm_to_vmem [thread:$0]  (!%p1141_p5), %s221_s5, 32, %s224_s29, %s212_s14  }
  0x48   : > { %232 = sbr.rel (%p1088_p8) target bundleno = 868 (0x364), region = 36  ;;  %s1167_s0 = sand.u32 (!%p1088_p8), 1, %s986_s16  }
  0x49   : > { %s693_s2 = sshll.u32 (!%p1088_p8), %s1167_s0, 2  ;;  %s235_s30 = scalar_lea.sflag (!%p1088_p8), [#allocation6], %s1167_s0 }
  0x4a   : > { %s238_s6 = scalar_lea.vmem (!%p1088_p8), [#allocation5], %s693_s2 }
  0x4d   : > { %965 = dma.done.wait (%p1078_p4), %s235_s30, 64  }
  0x4e   : > { %967 = vsyncadd (%p1078_p4), %s235_s30, 4294967232  ;;  %s243_s29 = sand.u32 1, %s1069_s21   ;;  %s694_s25 = sshll.u32 %s1167_s0, 1 }
  0x4f   : > { %s244_s22 = scalar_lea.sflag [#allocation9], %s243_s29  ;;  %s1177_s7 = scalar_lea.vmem [#allocation8], %s694_s25 }
  0x50   : > { %969 = dma.done.wait (%p1078_p4), %s244_s22, 32  }
  0x51   : > { %971 = vsyncadd (%p1078_p4), %s244_s22, 4294967264 }
  0x52   : > { %973 = dma.done.wait (%p56_p1), [#allocation9], 768  }
  0x53   : > { %975 = vsyncadd (%p56_p1), [#allocation9], 4294966528  ;;  %v1009_v0 = vmov 0   ;;  %v820_v1 = vld [vmem:[#allocation10 + $0x1c] ss:$12 sps:$4 sm:$0xff]   ;;  %vm346_vm0 = vcmask 261120   ;;  %v299_v9 = vlaneseq }
  0x54   : > { %382 = vmatprep.mubr.bf16.mxu0 %v1009_v0  ;;  %v822_v2 = vld [vmem:[#allocation10 + $0x18] ss:$12 sps:$4 sm:$0xff]   ;;  %362 = vmatprep.subr.bf16.mxu0 %v820_v1  ;;  %v825_v4 = vld [vmem:[#allocation10] ss:$12 sps:$4 sm:$0xff]   ;;  %v1010_v6 = vmov 0.0   ;;  %vm1011_vm1 = vmmov 0  }
  0x55   : > { %v823_v3 = vld [vmem:[#allocation10 + $0x4] ss:$12 sps:$4 sm:$0xff]   ;;  %363 = vmatpush1.bf16.msra.mxu0 %v822_v2  ;;  %v288_v5 = vld [vmem:[%s238_s6] sm:$0xf]  ;;  %717 = vmatprep.subr.bf16.mxu1 %v1010_v6  ;;  %v826_v7 = vld [vmem:[#allocation10 + $0x20] ss:$12 sps:$4 sm:$0xff]  }
  0x56   : > { %364 = vmatprep.subr.bf16.mxu0 %v823_v3  ;;  %721 = vmatprep.mubr.msk.bf16.mxu1 %vm1011_vm1, %v1010_v6  ;;  %v827_v8 = vld [vmem:[#allocation10 + $0x8] ss:$12 sps:$4 sm:$0xff]   ;;  %v300_v10 = vshrl.u32 %v299_v9, 7  ;;  %v485_v35 = vld [vmem:[%s1177_s7] sm:$0x3]  ;;  %vm491_vm4 = vcmask 64512  }
  0x57   : > { %718 = vmatpush3.bf16.msra.mxu1 %v826_v7  ;;  %v297_v12 = vld [vmem:[%s1253_s3] sm:$0x7]  ;;  %vm486_vm2 = vnez %v485_v35  ;;  %vm507_vm5 = vcmask 1043456   ;;  %s696_s8 = sshll.u32 %s1167_s0, 3  ;;  %s707_s12 = sshll.u32 %s994_s18, 7 }
  0x58   : > { %719 = vmatprep.subr.bf16.mxu1 %v1010_v6  ;;  %v301_v11 = vsub.s32 0, %v300_v10  ;;  %v305_v13 = vsub.s32 1, %v300_v10  ;;  %v309_v27 = vsub.s32 2, %v300_v10  ;;  %v487_v36 = vsel %vm486_vm2, 16843009, %v1009_v0  ;;  %s280_s13 = scalar_lea.vmem [#allocation11], %s696_s8  ;;  %s1201_s14 = scalar_lea.hbm %s1254_s4, %s707_s12 }
  0x59   : > { %365 = vmatpush1.bf16.msra.mxu0 %v825_v4  ;;  %v488_v37 = vunpack.c.0.s8 %v487_v36  ;;  %s569_s27 = sshll.u32 %s280_s13, 4  ;;  %s555_s18 = scalar_lea.sflag [#allocation7], %s1167_s0  ;;  %s1203_s27 = int_to_ptr.vmem [resolvable:$true] %s569_s27 }
  0x5a   : > { %725 = vmatprep.subr.bf16.mxu0 %v1010_v6  ;;  %v302_v14 = vrot.slane %v297_v12, %v301_v11  ;;  %v306_v15 = vrot.slane %v297_v12, %v305_v13  ;;  %v310_v28 = vrot.slane %v297_v12, %v309_v27  ;;  %s914_s9 = scalar_lea.vmem %s1203_s27, 128  ;;  %s1012_s26 = smov [#allocation11]  }
  0x5b   : > { %720 = vmatpush3.bf16.msra.mxu1 %v827_v8  ;;  %vm489_vm3 = vcmp.ne.s32.totalorder %v488_v37, 0  ;;  %p915_p1 = scmp.ne.s32.totalorder %s1203_s27, %s914_s9  ;;  %s918_s10 = sshll.u32 %s1012_s26, 4  ;;  %s919_s10 = int_to_ptr.vmem [resolvable:$false] %s918_s10 }
  0x5c   : > { %703 = vmatmul.mubr.msk.bf16.vlgmr.msra.gmra.mxu0 %vm346_vm0, %v288_v5  ;;  %731 = vmatprep.subr.bf16.mxu1 %v1010_v6  ;;  %s920_s2 = scalar_lea.vmem %s919_s10, 256  ;;  %p921_p5 = scmp.lt.s32.totalorder %s1203_s27, %s919_s10 }
  0x5d   : > { %727 = vmatprep.mubr.msk.bf16.mxu0 %vm1011_vm1, %v1010_v6  ;;  %p916_p4 = pnand %p915_p1, %p1121_p0  ;;  %p922_p7 = scmp.lt.s32.totalorder %s920_s2, %s914_s9 }
  0x5e   : > { %722 = vmatmul.mubr.msk.bf16.vlgmr.msra.gmra.mxu1 %vm346_vm0, %v288_v5 }
  0x5f   : > { %733 = vmatprep.mubr.msk.bf16.mxu1 %vm1011_vm1, %v1010_v6  ;;  %p917_p8 = pneg %p916_p4  ;;  %p923_p2 = por %p922_p7, %p921_p5 }
  0x61   : > { %p924_p6 = pnand %p923_p2, %p917_p8 }
 0x11c   : > { %v384_v16 = vpop.f32.mrf.mxu0 }
 0x11d   : > { %v385_v17 = vadd.f32 %v384_v16, %v302_v14 }
 0x11e   : > { %v386_v18 = vpop.f32.mrf.mxu0  ;;  %v425_v29 = vpop.f32.mrf.mxu1 }
 0x11f   : > { %v431_v19 = vmul.f32 0.35355338, %v385_v17  ;;  %v387_v20 = vadd.f32 %v386_v18, %v306_v15  ;;  %v426_v30 = vadd.f32 %v425_v29, %v310_v28 }
 0x120   : > { %v388_v21 = vpop.f32.mrf.mxu0  ;;  %v723_v31 = vpop.f32.mrf.mxu1 }
 0x121   : > { %v432_v22 = vpack.c.bf16 %v431_v19, %v431_v19  ;;  %v434_v23 = vpack.c.bf16 %v387_v20, %v387_v20  ;;  %v436_v32 = vpack.c.bf16 %v426_v30, %v426_v30 }
 0x122   : > { %v389_v24 = vpop.f32.mrf.mxu0  ;;  %v428_v33 = vpop.f32.mrf.mxu1 }
 0x123   : > { %433 = vst [vmem:[#allocation2] sm:$0xf] %v432_v22  ;;  %435 = vst [vmem:[#allocation3] sm:$0xf] %v434_v23 }
 0x124   : > { %437 = vst [vmem:[#allocation4] sm:$0xf] %v436_v32  ;;  %v724_v34 = vpop.f32.mrf.mxu1 }
 0x12a   : > { %v444_v25 = vld [vmem:[#allocation3] sm:$0xf]  ;;  %v443_v26 = vld [vmem:[#allocation2] sm:$0xf] }
 0x12b   : > { %726 = vmatpush3.bf16.xpose.msra.mxu0 %v444_v25  ;;  %v503_v44 = vld [vmem:[#allocation4] sm:$0xf] }
 0x12c   : > { %v509_v45 = vsel %vm507_vm5, %v503_v44, 0 }
 0x12d   : > { %732 = vmatpush3.bf16.msra.mxu1 %v509_v45 }
 0x132   : > { %728 = vmatmul.mubr.bf16.vlgmr.msra.gmra.mxu0 %v443_v26 }
 0x1f2   : > { %v479_v38 = vpop.f32.mrf.mxu0 }
 0x1f3   : > { %v490_v39 = vsel %vm489_vm3, -1e+09, %v479_v38 }
 0x1f4   : > { %v729_v40 = vpop.f32.mrf.mxu0  ;;  %v492_v41 = vsel %vm491_vm4, %v490_v39, -inf }
 0x1f5   : > { %493 = vmax.xlane.f32.xlu0 %v492_v41 }
 0x1f6   : > { %v482_v42 = vpop.f32.mrf.mxu0 }
 0x1f8   : > { %v730_v43 = vpop.f32.mrf.mxu0 }
 0x27e   : > { %v494_v46 = vpop.xlane.xlu0 %493 }
 0x27f   : > { %v495_v47 = vsub.f32 %v490_v39, %v494_v46 }
 0x281   : > { %v496_v48 = vmul.f32 1.442695, %v495_v47 }
 0x283   : > { %828 = vpow2.f32 %v496_v48 }
 0x290   : > { %v829_v49 = vpop.eup %828 }
 0x291   : > { %v498_v50 = vsel %vm491_vm4, %v829_v49, 0.0  ;;  %v502_v51 = vpack.c.bf16 %v829_v49, %v829_v49 }
 0x292   : > { %499 = vadd.xlane.f32.xlu0 %v498_v50 }
 0x293   : > { %734 = vmatmul.mubr.msk.bf16.vlgmr.msra.gmra.mxu1 %vm491_vm4, %v502_v51 }
 0x31b   : > { %v500_v52 = vpop.xlane.xlu0 %499 }
 0x31c   : > { %830 = vrcp.f32 %v500_v52 }
 0x329   : > { %v831_v53 = vpop.eup %830 }
 0x353   : > { %v545_v54 = vpop.f32.mrf.mxu1 }
 0x354   : > { %v551_v55 = vmul.f32 %v831_v53, %v545_v54 }
 0x355   : > { %v735_v56 = vpop.f32.mrf.mxu1 }
 0x356   : > { %553 = vst.msk [vmem:[%s280_s13] sm:$0xff] %vm346_vm0, %v551_v55 }
 0x357   : > { %v548_v57 = vpop.f32.mrf.mxu1 }
 0x358   : > { %927 = shalt.err (!%p924_p6)
}
 0x359   : > { %s928_s30 = scalar_lea.hbm %s1201_s14, 128  ;;  %s932_s29 = scalar_lea.hbm %s1254_s4, 256 }
 0x35a   : > { %p929_p9 = scmp.ne.s32.totalorder %s1201_s14, %s928_s30  ;;  %p933_p11 = scmp.lt.s32.totalorder %s1201_s14, %s1254_s4 }
 0x35b   : > { %p934_p3 = scmp.lt.s32.totalorder %s932_s29, %s928_s30 }
 0x35c   : > { %p930_p12 = pnand %p929_p9, %p1121_p0 }
 0x35d   : > { %p935_p1 = por %p934_p3, %p933_p11 }
 0x35e   : > { %p931_p13 = pneg %p930_p12 }
 0x360   : > { %p936_p4 = pnand %p935_p1, %p931_p13 }
 0x362   : > { %939 = shalt.err (!%p936_p4)
}
 0x363   : > { %745 = dma.vmem_to_hbm [thread:$0]  (%p1121_p0), %s1203_s27, 128, %s1201_s14, %s555_s18   ;;  %v736_v58 = vpop.f32.mrf.mxu1 }
 0x364 PF: > { %s581_s7 = sand.u32 1, %s982_s15   ;;  %p1270_p8 = scmp.ne.s32.totalorder %s1259_s24, 0 }
 0x365   : > { %s582_s21 = scalar_lea.sflag [#allocation7], %s581_s7 }
 0x366   : > { %p759_p5 = pnand %p687_p10, %p1270_p8 }
 0x368   : > { %p760_p7 = pneg %p759_p5 }
 0x36a   : > { %977 = dma.done.wait (%p760_p7), %s582_s21, 128  }
 0x36b   : > { %979 = vsyncadd (%p760_p7), %s582_s21, 4294967168  ;;  %s23_s20 = sadd.s32 1, %s1002_s20   ;;  %s1271_s11 = sld [smem:[#allocation17_spill]] }
 0x36c   : > { %p20_p2 = scmp.ge.s32.totalorder %s23_s20, 4   ;;  %s1272_s23 = sld [smem:[#allocation16_spill]] }
 0x36d   : > { %s1273_s15 = smov %s986_s16  ;;  %s1274_s16 = smov %s990_s17 }
 0x36e   : > { %s1276_s18 = smov %s998_s19  ;;  %22 = sbr.rel (!%p20_p2) target bundleno = 11 (0xb), region = 103 }
 0x371   : > { %s1275_s17 = smov %s1271_s11 }
 0x372   : > { %s1277_s19 = smov %s1272_s23 }
 0x373   :  { %587 = vsyncpa [#allocation6], 1 }
 0x374   :  { %589 = vsyncpa [#allocation6 + $0x1], 1 }
 0x375   :  { %590 = vsyncpa [#allocation9], 1 }
 0x376   :  { %592 = vsyncpa [#allocation9 + $0x1], 1 }
 0x377   :  { %593 = vsyncpa [#allocation7], 1 }
 0x378   :  { %595 = vsyncpa [#allocation7 + $0x1], 1 }

</bundles_post_ra>
